<compile_context>
chip_gen: v7x
topology: tpu7x:2x2x1
jax: 0.10.0
libtpu: 0.0.40
codegen_flags: <defaults>
</compile_context>

<pallas_src>
import functools

import numpy as np
import jax
import jax.numpy as jnp
from jax.experimental import pallas as pl
from jax.experimental.pallas import tpu as pltpu

LN_EPS = 1e-12
_VMEM_TILE_BUDGET = 32 * 1024 * 1024   # bytes for double-buffered in/out tiles
_VMEM_LIMIT_BYTES = 48 * 1024 * 1024   # scoped VMEM limit (safe on v5e/v6e/v7x)


def _sinusoidal_embeddings(n_pos: int, dim: int) -> np.ndarray:
    """Exact replica of create_sinusoidal_embeddings."""
    pos = np.arange(n_pos)[:, None].astype(np.float64)
    j = np.arange(dim)[None, :].astype(np.float64)
    angle = pos / np.power(10000.0, 2.0 * (j // 2) / dim)
    pe = np.zeros((n_pos, dim), dtype=np.float32)
    pe[:, 0::2] = np.sin(angle[:, 0::2]).astype(np.float32)
    pe[:, 1::2] = np.cos(angle[:, 1::2]).astype(np.float32)
    return pe


def _choose_s_chunk(S: int, H: int) -> int:
    """Chunk of the seq dim whose chunk*H store width is 128-lane aligned."""
    if 128 % H == 0:
        base = 128 // H
    elif H % 128 == 0:
        base = 1
    else:
        return S  # fall back to one whole-S slab (single store per tile)
    chunk = base
    while chunk * 2 <= S and (chunk * 2) * H <= 512:
        chunk *= 2
    return min(chunk, S)


def _choose_tm(M: int, S: int, H: int, out_itemsize: int) -> int:
    """Rows per grid step from a VMEM budget; prefer >=2 grid steps when possible."""
    per_row = 2 * (S * H * out_itemsize + H * 4)   # double-buffered output + input
    tm = _VMEM_TILE_BUDGET // per_row
    tm = max(8, (tm // 8) * 8)
    m_pad8 = -(-M // 8) * 8
    if m_pad8 >= 16:
        half = max(8, -(-(m_pad8 // 2) // 8) * 8)  # ~half the rows, sublane-aligned
        tm = min(tm, half)
    return min(tm, m_pad8)


def _pos_emb_kernel(x_ref, pos_ref, gamma_ref, beta_ref, o_ref, *, s_chunk):
    # x_ref:     (tm, H)     tile of flattened sub_goal rows
    # pos_ref:   (S, H)      positional embeddings for positions [0, S)
    # gamma_ref: (1, H), beta_ref: (1, H)
    # o_ref:     (tm, S*H)   lane-dense flattened output tile
    S, H = pos_ref.shape
    tm = x_ref.shape[0]

    x = x_ref[...].astype(jnp.float32)                       # (tm, H)
    g3 = gamma_ref[...].astype(jnp.float32)[None, :, :]      # (1, 1, H) hoisted
    b3 = beta_ref[...].astype(jnp.float32)[None, :, :]       # (1, 1, H) hoisted

    # Static (unrolled) loop over S in 128-lane-aligned chunks: keeps only a
    # (tm, sc, H) slab of intermediates live, and each store is a contiguous,
    # lane-aligned slice of the flattened output row.
    for s0 in range(0, S, s_chunk):
        sc = min(s_chunk, S - s0)
        p = pos_ref[s0:s0 + sc, :].astype(jnp.float32)        # (sc, H)

        e = x[:, None, :] + p[None, :, :]                     # (tm, sc, H)
        mean = jnp.mean(e, axis=-1, keepdims=True)
        cen = e - mean
        var = jnp.mean(cen * cen, axis=-1, keepdims=True)     # biased variance
        y = cen * jax.lax.rsqrt(var + LN_EPS)
        y = y * g3 + b3

        # Repack the slab to (tm, sc*H) once and store lane-dense.
        o_ref[:, s0 * H:(s0 + sc) * H] = y.reshape(tm, sc * H).astype(o_ref.dtype)


def position_embeddings_forward(sub_goal, seq_length, pos_table, ln_gamma, ln_beta,
                                *, tm=None):
    """sub_goal: (B, N, H); returns (B, N, seq_length, H)."""
    B, N, H = sub_goal.shape
    S = int(seq_length)
    M = B * N
    out_dtype = sub_goal.dtype   # keep f32 to match module; bf16 would halve write bytes
    # TODO(synk): dropout omitted — identity at inference (p only applies in training).

    x = sub_goal.reshape(M, H)
    pos = pos_table[:S, :].astype(jnp.float32)        # position_ids[:, :, :seq_length] lookup
    gamma = ln_gamma.reshape(1, H).astype(jnp.float32)
    beta = ln_beta.reshape(1, H).astype(jnp.float32)

    if tm is None:
        tm = _choose_tm(M, S, H, jnp.dtype(out_dtype).itemsize)
    tm = max(8, (tm // 8) * 8)

    n_tiles = -(-M // tm)            # cdiv: arbitrary M supported via row padding
    m_pad = n_tiles * tm
    if m_pad != M:
        x = jnp.pad(x, ((0, m_pad - M), (0, 0)))

    s_chunk = _choose_s_chunk(S, H)
    kernel = functools.partial(_pos_emb_kernel, s_chunk=s_chunk)

    out = pl.pallas_call(
        kernel,
        out_shape=jax.ShapeDtypeStruct((m_pad, S * H), out_dtype),
        grid_spec=pltpu.PrefetchScalarGridSpec(
            num_scalar_prefetch=0,
            grid=(n_tiles,),
            in_specs=[
                pl.BlockSpec((tm, H), lambda i: (i, 0)),
                pl.BlockSpec((S, H), lambda i: (0, 0)),
                pl.BlockSpec((1, H), lambda i: (0, 0)),
                pl.BlockSpec((1, H), lambda i: (0, 0)),
            ],
            out_specs=pl.BlockSpec((tm, S * H), lambda i: (i, 0)),
        ),
        compiler_params=pltpu.CompilerParams(
            dimension_semantics=("parallel",),
            vmem_limit_bytes=_VMEM_LIMIT_BYTES,
        ),
    )(x, pos, gamma, beta)

    return out[:M].reshape(B, N, S, H)


def _reference(sub_goal, seq_length, pos_table, gamma, beta):
    B, N, H = sub_goal.shape
    S = seq_length
    word = jnp.broadcast_to(sub_goal[:, :, None, :], (B, N, S, H))
    pos = pos_table[:S][None, None, :, :]
    e = word + pos
    mean = jnp.mean(e, axis=-1, keepdims=True)
    var = jnp.mean((e - mean) ** 2, axis=-1, keepdims=True)
    y = (e - mean) / jnp.sqrt(var + LN_EPS)
    return y * gamma + beta


if __name__ == "__main__":
    # Small shapes consistent with the module
    batch, num_node, hidden = 2, 4, 32
    max_pos_num = 16
    seq_length = 8

    key = jax.random.PRNGKey(0)
    sub_goal = jax.random.normal(key, (batch, num_node, hidden), dtype=jnp.float32)

    # Deterministic parameters (as in __init__):
    pos_table = jnp.asarray(_sinusoidal_embeddings(max_pos_num, hidden))  # Embedding weight
    ln_gamma = jnp.ones((hidden,), dtype=jnp.float32)                     # LayerNorm weight
    ln_beta = jnp.zeros((hidden,), dtype=jnp.float32)                     # LayerNorm bias

    out = position_embeddings_forward(sub_goal, seq_length, pos_table, ln_gamma, ln_beta)
    out = jax.block_until_ready(out)
    ref = _reference(sub_goal, seq_length, pos_table, ln_gamma, ln_beta)
    assert out.shape == (batch, num_node, seq_length, hidden)
    assert jnp.allclose(out, ref, rtol=1e-5, atol=1e-5)

    # Second check: non-divisible row count exercises padding + multi-step grid.
    b2, n2 = 3, 5
    sub_goal2 = jax.random.normal(jax.random.PRNGKey(1), (b2, n2, hidden), dtype=jnp.float32)
    out2 = position_embeddings_forward(sub_goal2, seq_length, pos_table, ln_gamma, ln_beta, tm=8)
    out2 = jax.block_until_ready(out2)
    ref2 = _reference(sub_goal2, seq_length, pos_table, ln_gamma, ln_beta)
    assert out2.shape == (b2, n2, seq_length, hidden)
    assert jnp.allclose(out2, ref2, rtol=1e-5, atol=1e-5)

    print("KERNEL_OK")
</pallas_src>

<mosaic_0001>
module attributes {stable_mosaic.version = 11 : i64} {
  func.func @_pos_emb_kernel(%arg0: i32, %arg1: memref<8x32xf32, #tpu.memory_space<vmem>>, %arg2: memref<8x32xf32, #tpu.memory_space<vmem>>, %arg3: memref<1x32xf32, #tpu.memory_space<vmem>>, %arg4: memref<1x32xf32, #tpu.memory_space<vmem>>, %arg5: memref<8x256xf32, #tpu.memory_space<vmem>>) attributes {dimension_semantics = [#tpu.dimension_semantics<parallel>], iteration_bounds = array<i64: 1>, scalar_prefetch = 0 : i64, scratch_operands = 0 : i64, tpu.core_type = #tpu.core_type<tc>, window_params = [{transform_indices = @transform_0, window_bounds = array<i64: 8, 32>}, {pipeline_mode = #tpu.pipeline_mode<synchronous>, transform_indices = @transform_1, window_bounds = array<i64: 8, 32>}, {pipeline_mode = #tpu.pipeline_mode<synchronous>, transform_indices = @transform_2, window_bounds = array<i64: 1, 32>}, {pipeline_mode = #tpu.pipeline_mode<synchronous>, transform_indices = @transform_3, window_bounds = array<i64: 1, 32>}, {transform_indices = @transform_4, window_bounds = array<i64: 8, 256>}]} {
    %c0 = arith.constant 0 : index
    %c0_0 = arith.constant 0 : index
    %0 = vector.load %arg1[%c0, %c0_0] : memref<8x32xf32, #tpu.memory_space<vmem>>, vector<8x32xf32>
    %c0_1 = arith.constant 0 : index
    %c0_2 = arith.constant 0 : index
    %1 = vector.load %arg3[%c0_1, %c0_2] : memref<1x32xf32, #tpu.memory_space<vmem>>, vector<1x32xf32>
    %2 = vector.shape_cast %1 : vector<1x32xf32> to vector<1x1x32xf32>
    %c0_3 = arith.constant 0 : index
    %c0_4 = arith.constant 0 : index
    %3 = vector.load %arg4[%c0_3, %c0_4] : memref<1x32xf32, #tpu.memory_space<vmem>>, vector<1x32xf32>
    %4 = vector.shape_cast %3 : vector<1x32xf32> to vector<1x1x32xf32>
    %c0_5 = arith.constant 0 : index
    %c0_6 = arith.constant 0 : index
    %5 = vector.load %arg2[%c0_5, %c0_6] : memref<8x32xf32, #tpu.memory_space<vmem>>, vector<8x32xf32>
    %6 = vector.shape_cast %0 : vector<8x32xf32> to vector<8x1x32xf32>
    %7 = vector.shape_cast %5 : vector<8x32xf32> to vector<1x8x32xf32>
    %8 = vector.broadcast %6 : vector<8x1x32xf32> to vector<8x8x32xf32>
    %9 = vector.broadcast %7 : vector<1x8x32xf32> to vector<8x8x32xf32>
    %10 = arith.addf %8, %9 : vector<8x8x32xf32>
    %cst = arith.constant dense<0.000000e+00> : vector<8x8xf32>
    %11 = vector.multi_reduction <add>, %10, %cst [2] : vector<8x8x32xf32> to vector<8x8xf32>
    %12 = vector.shape_cast %11 : vector<8x8xf32> to vector<8x8x1xf32>
    %cst_7 = arith.constant 3.200000e+01 : f32
    %13 = vector.broadcast %cst_7 : f32 to vector<8x8x1xf32>
    %14 = arith.divf %12, %13 : vector<8x8x1xf32>
    %15 = vector.broadcast %14 : vector<8x8x1xf32> to vector<8x8x32xf32>
    %16 = arith.subf %10, %15 : vector<8x8x32xf32>
    %17 = arith.mulf %16, %16 : vector<8x8x32xf32>
    %cst_8 = arith.constant dense<0.000000e+00> : vector<8x8xf32>
    %18 = vector.multi_reduction <add>, %17, %cst_8 [2] : vector<8x8x32xf32> to vector<8x8xf32>
    %19 = vector.shape_cast %18 : vector<8x8xf32> to vector<8x8x1xf32>
    %cst_9 = arith.constant 3.200000e+01 : f32
    %20 = vector.broadcast %cst_9 : f32 to vector<8x8x1xf32>
    %21 = arith.divf %19, %20 : vector<8x8x1xf32>
    %cst_10 = arith.constant 9.99999996E-13 : f32
    %22 = vector.broadcast %cst_10 : f32 to vector<8x8x1xf32>
    %23 = arith.addf %21, %22 : vector<8x8x1xf32>
    %24 = math.rsqrt %23 : vector<8x8x1xf32>
    %25 = vector.broadcast %24 : vector<8x8x1xf32> to vector<8x8x32xf32>
    %26 = arith.mulf %16, %25 : vector<8x8x32xf32>
    %27 = vector.broadcast %2 : vector<1x1x32xf32> to vector<8x8x32xf32>
    %28 = arith.mulf %26, %27 : vector<8x8x32xf32>
    %29 = vector.broadcast %4 : vector<1x1x32xf32> to vector<8x8x32xf32>
    %30 = arith.addf %28, %29 : vector<8x8x32xf32>
    %31 = vector.shape_cast %30 : vector<8x8x32xf32> to vector<8x256xf32>
    %c0_11 = arith.constant 0 : index
    %c0_12 = arith.constant 0 : index
    %32 = vector.load %arg5[%c0_11, %c0_12] : memref<8x256xf32, #tpu.memory_space<vmem>>, vector<8x256xf32>
    tpu.vector_store %arg5[%c0_11, %c0_12], %31 {strides = array<i32>} : memref<8x256xf32, #tpu.memory_space<vmem>>, vector<8x256xf32>,
    return
  }
  func.func @transform_0(%arg0: i32) -> (i32, i32) {
    %c0_i32 = arith.constant 0 : i32
    %c0_i32_0 = arith.constant 0 : i32
    return %arg0, %c0_i32 : i32, i32
  }
  func.func @transform_1(%arg0: i32) -> (i32, i32) {
    %c0_i32 = arith.constant 0 : i32
    %c0_i32_0 = arith.constant 0 : i32
    %c0_i32_1 = arith.constant 0 : i32
    return %c0_i32, %c0_i32_0 : i32, i32
  }
  func.func @transform_2(%arg0: i32) -> (i32, i32) {
    %c0_i32 = arith.constant 0 : i32
    %c0_i32_0 = arith.constant 0 : i32
    %c0_i32_1 = arith.constant 0 : i32
    return %c0_i32, %c0_i32_0 : i32, i32
  }
  func.func @transform_3(%arg0: i32) -> (i32, i32) {
    %c0_i32 = arith.constant 0 : i32
    %c0_i32_0 = arith.constant 0 : i32
    %c0_i32_1 = arith.constant 0 : i32
    return %c0_i32, %c0_i32_0 : i32, i32
  }
  func.func @transform_4(%arg0: i32) -> (i32, i32) {
    %c0_i32 = arith.constant 0 : i32
    %c0_i32_0 = arith.constant 0 : i32
    return %arg0, %c0_i32 : i32, i32
  }
}

</mosaic_0001>

<bundles_post_ra>
// kernel: tpu_custom_call.1
= control target key start
LH: loop header
LB: loop body
LE: loop exit
PB: predicated region body
PF: predicated region fallthrough
CT: control target
= control target key end

     0   :  { %9 = vsyncpa [#allocation3], 0  ;;  %s704_s0 = inlined_call_operand.hbm [shape: f32[8,32], index: 0, kind: input, shape index: {}]   ;;  %s705_s1 = inlined_call_operand.hbm [shape: f32[8,32], index: 1, kind: input, shape index: {}]   ;;  %s706_s2 = inlined_call_operand.vmem [shape: f32[1,32], index: 2, kind: input, shape index: {}]   ;;  %s707_s3 = inlined_call_operand.vmem [shape: f32[1,32], index: 3, kind: input, shape index: {}]   ;;  %s708_s4 = inlined_call_operand.hbm [shape: f32[8,256], index: 4, kind: output, shape index: {}]  }
   0x1   :  { %10 = vsyncpa [#allocation6], 0 }
   0x2   :  { %11 = vsyncpa [#allocation4], 0  ;;  %s564_s15 = smov [#allocation2]   ;;  %s565_s17 = smov [#allocation5]  }
   0x3   :  { %s18_s16 = sshll.u32 %s564_s15, 4  ;;  %s28_s18 = sshll.u32 %s565_s17, 4  ;;  %s19_s16 = int_to_ptr.vmem [resolvable:$true] %s18_s16  ;;  %s29_s18 = int_to_ptr.vmem [resolvable:$true] %s28_s18 }
   0x4   :  { %s492_s21 = scalar_lea.hbm %s704_s0, 128 }
   0x5   :  { %p493_p0 = scmp.ne.s32.totalorder %s704_s0, %s492_s21  ;;  %p496_p1 = scmp.lt.u32.totalorder %s492_s21, %s704_s0 }
   0x7   :  { %p498_p2 = pnand %p496_p1, %p493_p0 }
   0x9   :  { %501 = shalt.err (!%p498_p2)
}
   0xa   :  { %s502_s26 = scalar_lea.vmem %s19_s16, 128  ;;  %p507_p4 = scmp.lt.s32.totalorder %s19_s16, %s19_s16 }
   0xb   :  { %p503_p3 = scmp.ne.s32.totalorder %s19_s16, %s502_s26  ;;  %p508_p5 = scmp.lt.s32.totalorder %s502_s26, %s502_s26 }
   0xd   :  { %p509_p6 = por %p508_p5, %p507_p4 }
   0xf   :  { %p510_p7 = pnand %p509_p6, %p503_p3 }
  0x11   :  { %513 = shalt.err (!%p510_p7)
}
  0x12   :  { %21 = dma.hbm_to_vmem [thread:$0]  %s704_s0, 128, %s19_s16, [#allocation3]  }
  0x13   :  { %s514_s5 = scalar_lea.hbm %s705_s1, 128 }
  0x14   :  { %p515_p8 = scmp.ne.s32.totalorder %s705_s1, %s514_s5  ;;  %p518_p9 = scmp.lt.u32.totalorder %s514_s5, %s705_s1 }
  0x16   :  { %p520_p10 = pnand %p518_p9, %p515_p8 }
  0x18   :  { %523 = shalt.err (!%p520_p10)
}
  0x19   :  { %s524_s10 = scalar_lea.vmem %s29_s18, 128  ;;  %p529_p12 = scmp.lt.s32.totalorder %s29_s18, %s29_s18 }
  0x1a   :  { %p525_p11 = scmp.ne.s32.totalorder %s29_s18, %s524_s10  ;;  %p530_p13 = scmp.lt.s32.totalorder %s524_s10, %s524_s10 }
  0x1c   :  { %p531_p0 = por %p530_p13, %p529_p12 }
  0x1e   :  { %p532_p1 = pnand %p531_p0, %p525_p11 }
  0x20   :  { %535 = shalt.err (!%p532_p1)
}
  0x21   :  { %31 = dma.hbm_to_vmem [thread:$0]  %s705_s1, 128, %s29_s18, [#allocation6]  }
  0x22   :  { %558 = dma.done.wait [#allocation3], 128  }
  0x23   :  { %559 = vsyncadd [#allocation3], 4294967168 }
  0x24   :  { %560 = dma.done.wait [#allocation6], 128  }
  0x25   :  { %561 = vsyncadd [#allocation6], 4294967168  ;;  %v51_v0 = vlaneseq  ;;  %v566_v1 = vmov 1966171168   ;;  %v42_v6 = vld [vmem:[#allocation2] sm:$0xff]  ;;  %v45_v13 = vld [vmem:[#allocation5] sm:$0xff] }
  0x26   :  { %v49_v2 = vunpack.c.l.s4 %v566_v1  ;;  %v47_v9 = vcombine.high %v42_v6, %v42_v6  ;;  %vm144_vm0 = vcmask 261120   ;;  %s571_s15 = smov 96   ;;  %vm439_vm1 = vcmask 523264   ;;  %s572_s16 = smov [#allocation7]  }
  0x27   :  { %v622_v3 = vshrl.u32 %v51_v0, 7  ;;  %vm441_vm2 = vcmask 785408   ;;  %s454_s17 = sshll.u32 %s572_s16, 4  ;;  %s455_s17 = int_to_ptr.vmem [resolvable:$true] %s454_s17 }
  0x28   :  { %v50_v4 = vunpack.c.0.s8 %v49_v2  ;;  %s536_s18 = scalar_lea.vmem %s455_s17, 256  ;;  %p541_p3 = scmp.lt.s32.totalorder %s455_s17, %s455_s17 }
  0x29   :  { %v98_v8 = vsub.s32 0, %v622_v3  ;;  %p537_p2 = scmp.ne.s32.totalorder %s455_s17, %s536_s18  ;;  %p542_p4 = scmp.lt.s32.totalorder %s536_s18, %s536_s18 }
  0x2a   :  { %v53_v5 = vsub.s32 %v50_v4, %v622_v3 }
  0x2b   :  { %p543_p5 = por %p542_p4, %p541_p3 }
  0x2c   :  { %v54_v7 = vrot.slane %v42_v6, %v53_v5  ;;  %v61_v12 = vrot.slane %v47_v9, %v53_v5 }
  0x2d   :  { %p544_p6 = pnand %p543_p5, %p537_p2 }
  0x2e   :  { %v70_v10 = vrot.slane %v54_v7, %v53_v5  ;;  %v62_v11 = vcombine.high %v54_v7, %v54_v7  ;;  %v77_v17 = vrot.slane %v61_v12, %v53_v5  ;;  %v63_v18 = vcombine.high %v61_v12, %v61_v12 }
  0x30   :  { %v99_v14 = vrot.slane %v70_v10, %v98_v8  ;;  %v92_v15 = vcombine.high %v70_v10, %v70_v10  ;;  %v84_v16 = vrot.slane %v62_v11, %v53_v5  ;;  %v115_v23 = vrot.slane %v77_v17, %v98_v8 }
  0x31   :  { %v93_v24 = vcombine.high %v77_v17, %v77_v17  ;;  %v91_v25 = vrot.slane %v63_v18, %v53_v5 }
  0x32   :  { %v136_v19 = vadd.f32 %v99_v14, %v45_v13  ;;  %v107_v20 = vrot.slane %v92_v15, %v98_v8  ;;  %v103_v21 = vrot.slane %v84_v16, %v98_v8  ;;  %v94_v22 = vcombine.high %v84_v16, %v84_v16 }
  0x33   :  { %v140_v30 = vadd.f32 %v115_v23, %v45_v13  ;;  %v119_v31 = vrot.slane %v91_v25, %v98_v8  ;;  %v95_v32 = vcombine.high %v91_v25, %v91_v25  ;;  %v123_v36 = vrot.slane %v93_v24, %v98_v8 }
  0x34   :  { %v145_v26 = vsel %vm144_vm0, %v136_v19, 0.0  ;;  %v138_v27 = vadd.f32 %v107_v20, %v45_v13  ;;  %v137_v28 = vadd.f32 %v103_v21, %v45_v13  ;;  %v111_v29 = vrot.slane %v94_v22, %v98_v8 }
  0x35   :  { %146 = vadd.xlane.f32.xlu0 %v145_v26  ;;  %v141_v38 = vadd.f32 %v119_v31, %v45_v13  ;;  %v127_v39 = vrot.slane %v95_v32, %v98_v8  ;;  %v157_v40 = vsel %vm144_vm0, %v140_v30, 0.0  ;;  %v142_v41 = vadd.f32 %v123_v36, %v45_v13 }
  0x36   :  { %v151_v33 = vsel %vm144_vm0, %v138_v27, 0.0  ;;  %v148_v34 = vsel %vm144_vm0, %v137_v28, 0.0  ;;  %v139_v35 = vadd.f32 %v111_v29, %v45_v13 }
  0x37   :  { %152 = vadd.xlane.f32.xlu1 %v151_v33  ;;  %v160_v42 = vsel %vm144_vm0, %v141_v38, 0.0  ;;  %v143_v43 = vadd.f32 %v127_v39, %v45_v13  ;;  %v163_v44 = vsel %vm144_vm0, %v142_v41, 0.0 }
  0x38   :  { %v154_v37 = vsel %vm144_vm0, %v139_v35, 0.0 }
  0x39   :  { %149 = vadd.xlane.f32.xlu0 %v148_v34  ;;  %v166_v45 = vsel %vm144_vm0, %v143_v43, 0.0 }
  0x3b   :  { %155 = vadd.xlane.f32.xlu1 %v154_v37 }
  0x3d   :  { %158 = vadd.xlane.f32.xlu0 %v157_v40 }
  0x3f   :  { %161 = vadd.xlane.f32.xlu1 %v160_v42 }
  0x41   :  { %164 = vadd.xlane.f32.xlu0 %v163_v44 }
  0x43   :  { %167 = vadd.xlane.f32.xlu1 %v166_v45 }
  0xc2   :  { %v147_v46 = vpop.xlane.xlu0 %146 }
  0xc3   :  { %v170_v47 = vmul.f32 0.03125, %v147_v46 }
  0xc4   :  { %v153_v48 = vpop.xlane.xlu1 %152 }
  0xc5   :  { %v634_v49 = vsub.f32 %v136_v19, %v170_v47  ;;  %v172_v50 = vmul.f32 0.03125, %v153_v48 }
  0xc6   :  { %v150_v51 = vpop.xlane.xlu0 %149 }
  0xc7   :  { %v636_v52 = vsub.f32 %v138_v27, %v172_v50  ;;  %v171_v53 = vmul.f32 0.03125, %v150_v51  ;;  %v186_v54 = vmul.f32 %v634_v49, %v634_v49 }
  0xc8   :  { %v156_v55 = vpop.xlane.xlu1 %155 }
  0xc9   :  { %v640_v56 = vsub.f32 %v137_v28, %v171_v53  ;;  %v173_v57 = vmul.f32 0.03125, %v156_v55  ;;  %v194_v58 = vsel %vm144_vm0, %v186_v54, 0.0  ;;  %v188_v59 = vmul.f32 %v636_v52, %v636_v52 }
  0xca   :  { %v159_v60 = vpop.xlane.xlu0 %158  ;;  %195 = vadd.xlane.f32.xlu0 %v194_v58  ;;  %v567_v58 = vmov 1983009808  }
  0xcb   :  { %v645_v61 = vsub.f32 %v139_v35, %v173_v57  ;;  %v174_v62 = vmul.f32 0.03125, %v159_v60  ;;  %v200_v63 = vsel %vm144_vm0, %v188_v59, 0.0  ;;  %v187_v0 = vmul.f32 %v640_v56, %v640_v56  ;;  %v464_v60 = vld [vmem:[%s706_s2] ss:$0 sm:$0xff]  ;;  %s569_s2 = smov 32  }
  0xcc   :  { %v162_v1 = vpop.xlane.xlu1 %161  ;;  %v281_v59 = vunpack.c.l.s4 %v567_v58 }
  0xcd   :  { %v650_v2 = vsub.f32 %v140_v30, %v174_v62  ;;  %v175_v4 = vmul.f32 0.03125, %v162_v1  ;;  %v197_v5 = vsel %vm144_vm0, %v187_v0, 0.0  ;;  %v189_v6 = vmul.f32 %v645_v61, %v645_v61 }
  0xce   :  { %201 = vadd.xlane.f32.xlu0 %v200_v63  ;;  %v165_v7 = vpop.xlane.xlu0 %164  ;;  %198 = vadd.xlane.f32.xlu1 %v197_v5 }
  0xcf   :  { %v176_v8 = vmul.f32 0.03125, %v165_v7  ;;  %v655_v9 = vsub.f32 %v141_v38, %v175_v4  ;;  %v190_v10 = vmul.f32 %v650_v2, %v650_v2  ;;  %v203_v11 = vsel %vm144_vm0, %v189_v6, 0.0  ;;  %v465_v7 = vld [vmem:[%s707_s3] ss:$0 sm:$0xff]  ;;  %s570_s3 = smov 64  }
  0xd0   :  { %v168_v12 = vpop.xlane.xlu1 %167  ;;  %v282_v6 = vunpack.c.0.s8 %v281_v59 }
  0xd1   :  { %v660_v13 = vsub.f32 %v142_v41, %v176_v8  ;;  %v206_v14 = vsel %vm144_vm0, %v190_v10, 0.0  ;;  %v177_v15 = vmul.f32 0.03125, %v168_v12  ;;  %v191_v16 = vmul.f32 %v655_v9, %v655_v9 }
  0xd2   :  { %207 = vadd.xlane.f32.xlu0 %v206_v14  ;;  %204 = vadd.xlane.f32.xlu1 %v203_v11 }
  0xd3   :  { %v665_v17 = vsub.f32 %v143_v43, %v177_v15  ;;  %v192_v18 = vmul.f32 %v660_v13, %v660_v13  ;;  %v209_v19 = vsel %vm144_vm0, %v191_v16, 0.0 }
  0xd5   :  { %v212_v20 = vsel %vm144_vm0, %v192_v18, 0.0  ;;  %v193_v21 = vmul.f32 %v665_v17, %v665_v17  ;;  %v568_v18 = vmov 1934713408  }
  0xd6   :  { %213 = vadd.xlane.f32.xlu0 %v212_v20  ;;  %210 = vadd.xlane.f32.xlu1 %v209_v19  ;;  %v345_v19 = vunpack.c.l.s4 %v568_v18 }
  0xd7   :  { %v215_v22 = vsel %vm144_vm0, %v193_v21, 0.0 }
  0xda   :  { %216 = vadd.xlane.f32.xlu1 %v215_v22 }
 0x157   :  { %v196_v23 = vpop.xlane.xlu0 %195 }
 0x158   :  { %v218_v24 = vmul.f32 0.03125, %v196_v23  ;;  %v285_v23 = vsub.s32 %v282_v6, %v622_v3 }
 0x15a   :  { %v226_v25 = vadd.f32 1e-12, %v218_v24 }
 0x15b   :  { %v202_v26 = vpop.xlane.xlu0 %201  ;;  %v199_v27 = vpop.xlane.xlu1 %198 }
 0x15c   :  { %v220_v28 = vmul.f32 0.03125, %v202_v26  ;;  %v219_v29 = vmul.f32 0.03125, %v199_v27  ;;  %476 = vrsqrt.f32 %v226_v25 }
 0x15e   :  { %v228_v30 = vadd.f32 1e-12, %v220_v28  ;;  %v227_v31 = vadd.f32 1e-12, %v219_v29  ;;  %v346_v28 = vunpack.c.0.s8 %v345_v19 }
 0x15f   :  { %v208_v32 = vpop.xlane.xlu0 %207  ;;  %v205_v33 = vpop.xlane.xlu1 %204 }
 0x160   :  { %478 = vrsqrt.f32 %v228_v30  ;;  %v222_v34 = vmul.f32 0.03125, %v208_v32  ;;  %v221_v35 = vmul.f32 0.03125, %v205_v33 }
 0x161   :  { %480 = vrsqrt.f32 %v227_v31 }
 0x162   :  { %v230_v36 = vadd.f32 1e-12, %v222_v34  ;;  %v229_v37 = vadd.f32 1e-12, %v221_v35 }
 0x163   :  { %v214_v38 = vpop.xlane.xlu0 %213  ;;  %v211_v39 = vpop.xlane.xlu1 %210 }
 0x164   :  { %482 = vrsqrt.f32 %v230_v36  ;;  %v224_v40 = vmul.f32 0.03125, %v214_v38  ;;  %v223_v41 = vmul.f32 0.03125, %v211_v39 }
 0x165   :  { %484 = vrsqrt.f32 %v229_v37 }
 0x166   :  { %v232_v42 = vadd.f32 1e-12, %v224_v40  ;;  %v231_v43 = vadd.f32 1e-12, %v223_v41  ;;  %v477_v46 = vpop.eup %476 }
 0x167   :  { %v217_v44 = vpop.xlane.xlu1 %216  ;;  %v242_v55 = vmul.f32 %v477_v46, %v634_v49 }
 0x168   :  { %486 = vrsqrt.f32 %v232_v42  ;;  %v225_v45 = vmul.f32 0.03125, %v217_v44 }
 0x169   :  { %488 = vrsqrt.f32 %v231_v43  ;;  %v256_v4 = vmul.f32 %v464_v60, %v242_v55 }
 0x16a   :  { %v479_v47 = vpop.eup %478  ;;  %v233_v48 = vadd.f32 1e-12, %v225_v45 }
 0x16b   :  { %v481_v50 = vpop.eup %480  ;;  %v244_v51 = vmul.f32 %v479_v47, %v636_v52 }
 0x16c   :  { %v243_v53 = vmul.f32 %v481_v50, %v640_v56  ;;  %490 = vrsqrt.f32 %v233_v48 }
 0x16d   :  { %v258_v62 = vmul.f32 %v464_v60, %v244_v51 }
 0x16e   :  { %v483_v54 = vpop.eup %482  ;;  %v257_v63 = vmul.f32 %v464_v60, %v243_v53 }
 0x16f   :  { %v485_v57 = vpop.eup %484  ;;  %v246_v1 = vmul.f32 %v483_v54, %v650_v2  ;;  %v272_v11 = vadd.f32 %v465_v7, %v258_v62  ;;  %v270_v2 = vadd.f32 %v465_v7, %v256_v4 }
 0x170   :  { %v245_v0 = vmul.f32 %v485_v57, %v645_v61  ;;  %v271_v10 = vadd.f32 %v465_v7, %v257_v63 }
 0x171   :  { %v260_v14 = vmul.f32 %v464_v60, %v246_v1  ;;  %v279_v24 = vcombine.high %v270_v2, %v272_v11  ;;  %v278_v25 = vcombine.low %v270_v2, %v272_v11 }
 0x172   :  { %v487_v52 = vpop.eup %486  ;;  %v259_v56 = vmul.f32 %v464_v60, %v245_v0 }
 0x173   :  { %v489_v5 = vpop.eup %488  ;;  %v248_v49 = vmul.f32 %v487_v52, %v660_v13  ;;  %v274_v26 = vadd.f32 %v465_v7, %v260_v14  ;;  %v293_v34 = vrot.slane %v279_v24, %v285_v23  ;;  %v286_v35 = vrot.slane %v278_v25, %v285_v23 }
 0x174   :  { %v247_v8 = vmul.f32 %v489_v5, %v655_v9  ;;  %v273_v12 = vadd.f32 %v465_v7, %v259_v56 }
 0x175   :  { %v262_v61 = vmul.f32 %v464_v60, %v248_v49 }
 0x176   :  { %v491_v15 = vpop.eup %490  ;;  %v295_v16 = vcombine.high %v271_v10, %v273_v12  ;;  %v294_v20 = vcombine.low %v271_v10, %v273_v12  ;;  %v261_v21 = vmul.f32 %v464_v60, %v247_v8 }
 0x177   :  { %v249_v13 = vmul.f32 %v491_v15, %v665_v17  ;;  %v276_v22 = vadd.f32 %v465_v7, %v262_v61  ;;  %v349_v17 = vsub.s32 %v346_v28, %v622_v3 }
 0x178   :  { %v309_v27 = vrot.slane %v295_v16, %v285_v23  ;;  %v302_v29 = vrot.slane %v294_v20, %v285_v23  ;;  %v275_v30 = vadd.f32 %v465_v7, %v261_v21 }
 0x179   :  { %v263_v9 = vmul.f32 %v464_v60, %v249_v13  ;;  %v311_v32 = vcombine.high %v274_v26, %v276_v22  ;;  %v310_v33 = vcombine.low %v274_v26, %v276_v22 }
 0x17a   :  { %v358_v38 = vcombine.low %v293_v34, %v309_v27  ;;  %v342_v39 = vcombine.low %v286_v35, %v302_v29  ;;  %v343_v47 = vcombine.high %v286_v35, %v302_v29  ;;  %v359_v62 = vcombine.high %v293_v34, %v309_v27 }
 0x17b   :  { %v277_v31 = vadd.f32 %v465_v7, %v263_v9  ;;  %v325_v40 = vrot.slane %v311_v32, %v285_v23  ;;  %v318_v42 = vrot.slane %v310_v33, %v285_v23 }
 0x17c   :  { %v366_v48 = vrot.slane %v358_v38, %v349_v17  ;;  %v350_v51 = vrot.slane %v342_v39, %v349_v17  ;;  %v357_v60 = vrot.slane %v343_v47, %v349_v17  ;;  %v373_v52 = vrot.slane %v359_v62, %v349_v17 }
 0x17d   :  { %v327_v36 = vcombine.high %v275_v30, %v277_v31  ;;  %v326_v37 = vcombine.low %v275_v30, %v277_v31 }
 0x17f   :  { %v341_v41 = vrot.slane %v327_v36, %v285_v23  ;;  %v334_v43 = vrot.slane %v326_v37, %v285_v23 }
 0x181   :  { %v390_v44 = vcombine.low %v325_v40, %v341_v41  ;;  %v374_v45 = vcombine.low %v318_v42, %v334_v43  ;;  %v375_v46 = vcombine.high %v318_v42, %v334_v43  ;;  %v391_v58 = vcombine.high %v325_v40, %v341_v41 }
 0x183   :  { %v398_v50 = vrot.slane %v390_v44, %v349_v17  ;;  %v382_v53 = vrot.slane %v374_v45, %v349_v17  ;;  %v389_v57 = vrot.slane %v375_v46, %v349_v17  ;;  %v405_v1 = vrot.slane %v391_v58, %v349_v17 }
 0x185   :  { %v411_v54 = vcombine.high %v366_v48, %v398_v50  ;;  %v407_v55 = vcombine.high %v350_v51, %v382_v53  ;;  %v410_v59 = vcombine.low %v366_v48, %v398_v50  ;;  %v406_v3 = vcombine.low %v350_v51, %v382_v53 }
 0x186   :  { %v408_v63 = vcombine.low %v357_v60, %v389_v57  ;;  %v409_v0 = vcombine.high %v357_v60, %v389_v57  ;;  %v412_v4 = vcombine.low %v373_v52, %v405_v1  ;;  %v413_v56 = vcombine.high %v373_v52, %v405_v1 }
 0x187   :  { %427 = vrot.lane.b32.xlu1 %v411_v54, %s569_s2  ;;  %415 = vrot.lane.b32.xlu0 %v407_v55, %s569_s2 }
 0x18b   :  { %419 = vrot.lane.b32.xlu1 %v408_v63, %s570_s3  ;;  %423 = vrot.lane.b32.xlu0 %v409_v0, %s571_s15 }
 0x18f   :  { %431 = vrot.lane.b32.xlu1 %v412_v4, %s570_s3 }
 0x193   :  { %435 = vrot.lane.b32.xlu1 %v413_v56, %s571_s15 }
 0x1f9   :  { %v428_v5 = vpop.permute.xlu1 %427  ;;  %v416_v6 = vpop.permute.xlu0 %415 }
 0x1fa   :  { %v438_v49 = vsel %vm144_vm0, %v406_v3, %v416_v6  ;;  %v443_v14 = vsel %vm144_vm0, %v410_v59, %v428_v5 }
 0x1fd   :  { %v420_v7 = vpop.permute.xlu1 %419  ;;  %v424_v8 = vpop.permute.xlu0 %423 }
 0x1fe   :  { %v440_v10 = vsel %vm439_vm1, %v438_v49, %v420_v7 }
 0x1ff   :  { %v442_v11 = vsel %vm441_vm2, %v440_v10, %v424_v8 }
 0x200   :  { %446 = vst [vmem:[#allocation7] sm:$0xff] %v442_v11 }
 0x201   :  { %v432_v12 = vpop.permute.xlu1 %431 }
 0x202   :  { %v444_v61 = vsel %vm439_vm1, %v443_v14, %v432_v12 }
 0x205   :  { %v436_v15 = vpop.permute.xlu1 %435 }
 0x206   :  { %v445_v2 = vsel %vm441_vm2, %v444_v61, %v436_v15 }
 0x207   :  { %447 = vst [vmem:[#allocation7 + $0x8] sm:$0xff] %v445_v2 }
 0x208   :  { %547 = shalt.err (!%p544_p6)
}
 0x209   :  { %s548_s21 = scalar_lea.hbm %s708_s4, 256 }
 0x20a   :  { %p549_p7 = scmp.ne.s32.totalorder %s708_s4, %s548_s21  ;;  %p552_p8 = scmp.lt.u32.totalorder %s548_s21, %s708_s4 }
 0x20c   :  { %p554_p9 = pnand %p552_p8, %p549_p7 }
 0x20e   :  { %557 = shalt.err (!%p554_p9)
}
 0x20f   :  { %457 = dma.vmem_to_hbm [thread:$0]  %s455_s17, 256, %s708_s4, [#allocation4]  }
 0x210   :  { %562 = dma.done.wait [#allocation4], 256  }
 0x211   :  { %563 = vsyncadd [#allocation4], 4294967040 }
 0x212   :  { %461 = vsyncpa [#allocation3], 1 }
 0x213   :  { %462 = vsyncpa [#allocation6], 1 }
 0x214   :  { %463 = vsyncpa [#allocation4], 1 }

</bundles_post_ra>
